<compile_context>
chip_gen: v7x
topology: tpu7x:2x2x1
jax: 0.10.0
libtpu: 0.0.40
codegen_flags: <defaults>
</compile_context>

<pallas_src>
import jax
import jax.numpy as jnp
import numpy as np
from jax.experimental import pallas as pl
from jax.experimental.pallas import tpu as pltpu

_LANE = 128


# ---------------------------------------------------------------------------
# Kernels
# ---------------------------------------------------------------------------
def _drop_path_kernel(x_ref, scale_ref, o_ref):
    # x_ref: (tb, tile); scale_ref: (tb, 1) float32 (lane-broadcast).
    # Mixed-dtype multiply promotes to f32, then cast back to the output dtype.
    o_ref[...] = (x_ref[...] * scale_ref[...]).astype(o_ref.dtype)


def _drop_path_residual_kernel(x_ref, res_ref, scale_ref, o_ref):
    # Fused residual add: out = residual + scale * x (saves one HBM pass vs a
    # separate add; the extra add is free in the VPU slot, the kernel stays
    # memory-bound).
    o_ref[...] = (res_ref[...] + x_ref[...] * scale_ref[...]).astype(o_ref.dtype)


# ---------------------------------------------------------------------------
# Generation-aware VMEM budgeting
# ---------------------------------------------------------------------------
def _vmem_capacity_bytes():
    try:
        cap = int(pltpu.get_tpu_info().vmem_capacity_bytes)
        if cap >= (32 << 20):
            return cap
    except Exception:
        pass
    # Fallback keeps the derived limits < 64 MiB, so it is safe even on v7x.
    return 128 << 20


def _vmem_budget(n_streams):
    """Per-block byte budget + explicit scoped-VMEM limit.

    Each big (B, N)-shaped stream (input / residual / output) is double
    buffered by the pipeline, so the working set is ~2 * n_streams * block.
    """
    cap = _vmem_capacity_bytes()
    block_budget = max(1 << 20, min(8 << 20, cap // (4 * n_streams)))
    vmem_limit = min((cap * 3) // 4, 2 * n_streams * block_budget + (4 << 20))
    return block_budget, vmem_limit


def _choose_tiles(B, N, itemsize, budget_bytes):
    """Row block modest; lane block as wide as the VMEM budget allows."""
    # Rows: full B when small (block == full dim is always legal, regardless of
    # divisibility); otherwise a fixed 64-row block (multiple of 8) with a
    # masked edge block via the cdiv grid.
    tb = B if B <= 64 else 64

    # VMEM footprint per lane column: the second-minor dim pads up to the
    # sublane tile, i.e. at least 32 bytes of rows regardless of dtype.
    row_bytes = max(tb * itemsize, 32)
    row_bytes = ((row_bytes + 31) // 32) * 32

    if N < _LANE:
        tile = N  # block last dim == full array dim -> always legal
    else:
        max_lanes = max(_LANE, (budget_bytes // row_bytes) // _LANE * _LANE)
        # Multiple of 128, no divisibility requirement on N: the ragged tail is
        # a masked partial block (grid uses cdiv below).
        tile = min((N // _LANE) * _LANE, max_lanes)
    return tb, tile


# ---------------------------------------------------------------------------
# Wrapper
# ---------------------------------------------------------------------------
def drop_path_pallas(x, drop_prob: float = 0.0, training: bool = False, *,
                     key=None, residual=None):
    """Pallas implementation of drop_path (per-sample stochastic depth).

    If `residual` is given, computes `residual + drop_path(x)` in one fused
    HBM pass (the common use inside a residual block).
    """
    if drop_prob == 0.0 or not training:
        return x if residual is None else residual + x

    assert key is not None, "need a PRNG key when training with drop_prob > 0"
    B = x.shape[0]
    keep_prob = 1.0 - float(drop_prob)

    # Bernoulli(keep_prob) mask via floor(keep_prob + U[0,1)), kept in float32
    # for exactness; the in-kernel multiply upcasts per-vreg and casts back.
    u = jax.random.uniform(key, (B,), dtype=jnp.float32)
    mask = jnp.floor(jnp.float32(keep_prob) + u)
    scale = (mask / jnp.float32(keep_prob)).reshape(B, 1)  # (B, 1) float32

    N = int(np.prod(x.shape[1:])) if x.ndim > 1 else 1
    x2 = x.reshape(B, N)

    itemsize = jnp.dtype(x.dtype).itemsize
    n_streams = 2 if residual is None else 3
    block_budget, vmem_limit = _vmem_budget(n_streams)
    tb, tile = _choose_tiles(B, N, itemsize, block_budget)
    grid = (pl.cdiv(B, tb), pl.cdiv(N, tile))

    x_spec = pl.BlockSpec((tb, tile), lambda i, j: (i, j))
    s_spec = pl.BlockSpec((tb, 1), lambda i, j: (i, 0))
    out_spec = pl.BlockSpec((tb, tile), lambda i, j: (i, j))

    params = pltpu.CompilerParams(
        dimension_semantics=("parallel", "parallel"),
        vmem_limit_bytes=int(vmem_limit),
    )

    if residual is None:
        out = pl.pallas_call(
            _drop_path_kernel,
            out_shape=jax.ShapeDtypeStruct((B, N), x.dtype),
            grid_spec=pl.GridSpec(
                grid=grid,
                in_specs=[x_spec, s_spec],
                out_specs=out_spec,
            ),
            compiler_params=params,
        )(x2, scale)
    else:
        r2 = residual.reshape(B, N)
        out = pl.pallas_call(
            _drop_path_residual_kernel,
            out_shape=jax.ShapeDtypeStruct((B, N), x.dtype),
            grid_spec=pl.GridSpec(
                grid=grid,
                in_specs=[x_spec, x_spec, s_spec],
                out_specs=out_spec,
            ),
            compiler_params=params,
        )(x2, r2, scale)

    return out.reshape(x.shape)


class DropPath:
    """Drop paths (Stochastic Depth) per sample. No learnable parameters."""

    def __init__(self, drop_prob=None):
        self.drop_prob = 0.0 if drop_prob is None else float(drop_prob)
        self.training = True

    def __call__(self, x, *, key=None):
        return drop_path_pallas(x, self.drop_prob, self.training, key=key)


if __name__ == "__main__":
    root = jax.random.PRNGKey(0)
    k_x, k_mask, k_x2, k_x3, k_res = jax.random.split(root, 5)

    # NCHW input, small shapes: batch=2, channels=4, spatial=16x16 (N=1024)
    x = jax.random.normal(k_x, (2, 4, 16, 16), dtype=jnp.float32)

    module = DropPath(drop_prob=0.3)
    module.training = True

    y = jax.block_until_ready(module(x, key=k_mask))

    # reference (plain JAX) with the identical mask draw (f32, as in the kernel)
    keep_prob = 1.0 - module.drop_prob
    u = jax.random.uniform(k_mask, (x.shape[0],), dtype=jnp.float32)
    mask = jnp.floor(jnp.float32(keep_prob) + u)
    ref = x / keep_prob * mask[:, None, None, None]
    np.testing.assert_allclose(np.asarray(y), np.asarray(ref), rtol=1e-6, atol=1e-6)

    # small awkward feature size (N = 3*5*7 = 105 < 128) -> full-dim lane block
    x_awk = jax.random.normal(k_x2, (2, 3, 5, 7), dtype=jnp.float32)
    y_awk = jax.block_until_ready(module(x_awk, key=k_mask))
    ref_awk = x_awk / keep_prob * mask[:, None, None, None]
    np.testing.assert_allclose(np.asarray(y_awk), np.asarray(ref_awk),
                               rtol=1e-6, atol=1e-6)

    # ragged N >= 128, not a multiple of 128 (N = 3*10*13 = 390)
    # -> cdiv grid with masked edge block, no pad/slice in the wrapper
    x_rag = jax.random.normal(k_x3, (2, 3, 10, 13), dtype=jnp.float32)
    y_rag = jax.block_until_ready(module(x_rag, key=k_mask))
    ref_rag = x_rag / keep_prob * mask[:, None, None, None]
    np.testing.assert_allclose(np.asarray(y_rag), np.asarray(ref_rag),
                               rtol=1e-6, atol=1e-6)

    # fused residual-add variant: out = residual + drop_path(x)
    resid = jax.random.normal(k_res, x.shape, dtype=jnp.float32)
    y_fused = jax.block_until_ready(
        drop_path_pallas(x, module.drop_prob, True, key=k_mask, residual=resid))
    np.testing.assert_allclose(np.asarray(y_fused), np.asarray(resid + ref),
                               rtol=1e-6, atol=1e-6)

    # eval mode / drop_prob==0 -> identity
    module.training = False
    y_eval = jax.block_until_ready(module(x, key=k_mask))
    np.testing.assert_allclose(np.asarray(y_eval), np.asarray(x))

    print("KERNEL_OK")
</pallas_src>

<mosaic_0001>
module attributes {stable_mosaic.version = 11 : i64} {
  func.func @_drop_path_kernel(%arg0: i32, %arg1: i32, %arg2: memref<2x1024xf32, #tpu.memory_space<vmem>>, %arg3: memref<2x1xf32, #tpu.memory_space<vmem>>, %arg4: memref<2x1024xf32, #tpu.memory_space<vmem>>) attributes {dimension_semantics = [#tpu.dimension_semantics<parallel>, #tpu.dimension_semantics<parallel>], iteration_bounds = array<i64: 1, 1>, scalar_prefetch = 0 : i64, scratch_operands = 0 : i64, tpu.core_type = #tpu.core_type<tc>, window_params = [{transform_indices = @transform_0, window_bounds = array<i64: 2, 1024>}, {transform_indices = @transform_1, window_bounds = array<i64: 2, 1>}, {transform_indices = @transform_2, window_bounds = array<i64: 2, 1024>}]} {
    %c0 = arith.constant 0 : index
    %c0_0 = arith.constant 0 : index
    %0 = vector.load %arg2[%c0, %c0_0] : memref<2x1024xf32, #tpu.memory_space<vmem>>, vector<2x1024xf32>
    %c0_1 = arith.constant 0 : index
    %c0_2 = arith.constant 0 : index
    %1 = vector.load %arg3[%c0_1, %c0_2] : memref<2x1xf32, #tpu.memory_space<vmem>>, vector<2x1xf32>
    %2 = vector.broadcast %1 : vector<2x1xf32> to vector<2x1024xf32>
    %3 = arith.mulf %0, %2 : vector<2x1024xf32>
    %c0_3 = arith.constant 0 : index
    %c0_4 = arith.constant 0 : index
    %4 = vector.load %arg4[%c0_3, %c0_4] : memref<2x1024xf32, #tpu.memory_space<vmem>>, vector<2x1024xf32>
    tpu.vector_store %arg4[%c0_3, %c0_4], %3 {strides = array<i32>} : memref<2x1024xf32, #tpu.memory_space<vmem>>, vector<2x1024xf32>,
    return
  }
  func.func @transform_0(%arg0: i32, %arg1: i32) -> (i32, i32) {
    %c0_i32 = arith.constant 0 : i32
    return %arg0, %arg1 : i32, i32
  }
  func.func @transform_1(%arg0: i32, %arg1: i32) -> (i32, i32) {
    %c0_i32 = arith.constant 0 : i32
    %c0_i32_0 = arith.constant 0 : i32
    return %arg0, %c0_i32 : i32, i32
  }
  func.func @transform_2(%arg0: i32, %arg1: i32) -> (i32, i32) {
    %c0_i32 = arith.constant 0 : i32
    return %arg0, %arg1 : i32, i32
  }
}

</mosaic_0001>

<bundles_post_ra>
// kernel: tpu_custom_call.1
= control target key start
LH: loop header
LB: loop body
LE: loop exit
PB: predicated region body
PF: predicated region fallthrough
CT: control target
= control target key end

     0   :  { %7 = vsyncpa [#allocation3], 0  ;;  %s157_s0 = inlined_call_operand.hbm [shape: f32[2,1024], index: 0, kind: input, shape index: {}]   ;;  %s158_s1 = inlined_call_operand.vmem [shape: f32[2,1], index: 1, kind: input, shape index: {}]   ;;  %s159_s2 = inlined_call_operand.hbm [shape: f32[2,1024], index: 2, kind: output, shape index: {}]  }
   0x1   :  { %8 = vsyncpa [#allocation4], 0  ;;  %s111_s9 = smov [#allocation2]   ;;  %s63_s13 = scalar_lea.hbm %s157_s0, 256 }
   0x2   :  { %s15_s10 = sshll.u32 %s111_s9, 4  ;;  %p64_p0 = scmp.ne.s32.totalorder %s157_s0, %s63_s13  ;;  %s16_s10 = int_to_ptr.vmem [resolvable:$true] %s15_s10 }
   0x3   :  { %p67_p1 = scmp.lt.u32.totalorder %s63_s13, %s157_s0 }
   0x5   :  { %p69_p2 = pnand %p67_p1, %p64_p0 }
   0x7   :  { %72 = shalt.err (!%p69_p2)
}
   0x8   :  { %s73_s18 = scalar_lea.vmem %s16_s10, 256  ;;  %p78_p4 = scmp.lt.s32.totalorder %s16_s10, %s16_s10 }
   0x9   :  { %p74_p3 = scmp.ne.s32.totalorder %s16_s10, %s73_s18  ;;  %p79_p5 = scmp.lt.s32.totalorder %s73_s18, %s73_s18 }
   0xb   :  { %p80_p6 = por %p79_p5, %p78_p4 }
   0xd   :  { %p81_p7 = pnand %p80_p6, %p74_p3 }
   0xf   :  { %84 = shalt.err (!%p81_p7)
}
  0x10   :  { %18 = dma.hbm_to_vmem [thread:$0]  %s157_s0, 256, %s16_s10, [#allocation3]  }
  0x11   :  { %107 = dma.done.wait [#allocation3], 256  }
  0x12   :  { %108 = vsyncadd [#allocation3], 4294967040  ;;  %v112_v0 = vmov 0   ;;  %v26_v1 = vld [vmem:[%s158_s1] sm:$0x3]  ;;  %v34_v4 = vlaneseq  ;;  %v25_v10 = vld [vmem:[#allocation2 + $0x8] sm:$0xff] }
  0x13   :  { %62 = vset.pattern.permute.xlu0 %v112_v0  ;;  %v113_v2 = vmov 269488144   ;;  %v24_v9 = vld [vmem:[#allocation2] sm:$0xff]  ;;  %s114_s23 = smov [#allocation5]  }
  0x14   :  { %29 = vperm.xlu0 %62, %v26_v1   ;;  %v32_v3 = vunpack.c.l.s4 %v113_v2  ;;  %v35_v6 = vshrl.u32 %v34_v4, 7  ;;  %s49_s0 = sshll.u32 %s114_s23, 4  ;;  %s50_s0 = int_to_ptr.vmem [resolvable:$true] %s49_s0 }
  0x15   :  { %s85_s24 = scalar_lea.vmem %s50_s0, 256  ;;  %p90_p9 = scmp.lt.s32.totalorder %s50_s0, %s50_s0 }
  0x16   :  { %v33_v5 = vunpack.c.0.s8 %v32_v3  ;;  %p86_p8 = scmp.ne.s32.totalorder %s50_s0, %s85_s24  ;;  %p91_p10 = scmp.lt.s32.totalorder %s85_s24, %s85_s24 }
  0x18   :  { %v36_v7 = vsub.s32 %v33_v5, %v35_v6  ;;  %p92_p11 = por %p91_p10, %p90_p9 }
  0x1a   :  { %p93_p12 = pnand %p92_p11, %p86_p8 }
  0x93   :  { %v30_v8 = vpop.permute.xlu0 %29 }
  0x94   :  { %v37_v11 = vrot.slane %v30_v8, %v36_v7 }
  0x96   :  { %v39_v12 = vmul.f32 %v37_v11, %v24_v9  ;;  %v40_v13 = vmul.f32 %v37_v11, %v25_v10 }
  0x98   :  { %41 = vst [vmem:[#allocation5] sm:$0xff] %v39_v12  ;;  %42 = vst [vmem:[#allocation5 + $0x8] sm:$0xff] %v40_v13 }
  0x99   :  { %96 = shalt.err (!%p93_p12)
}
  0x9a   :  { %s97_s26 = scalar_lea.hbm %s159_s2, 256 }
  0x9b   :  { %p98_p13 = scmp.ne.s32.totalorder %s159_s2, %s97_s26  ;;  %p101_p0 = scmp.lt.u32.totalorder %s97_s26, %s159_s2 }
  0x9d   :  { %p103_p1 = pnand %p101_p0, %p98_p13 }
  0x9f   :  { %106 = shalt.err (!%p103_p1)
}
  0xa0   :  { %52 = dma.vmem_to_hbm [thread:$0]  %s50_s0, 256, %s159_s2, [#allocation4]  }
  0xa1   :  { %109 = dma.done.wait [#allocation4], 256  }
  0xa2   :  { %110 = vsyncadd [#allocation4], 4294967040 }
  0xa3   :  { %56 = vsyncpa [#allocation3], 1 }
  0xa4   :  { %57 = vsyncpa [#allocation4], 1 }

</bundles_post_ra>
